<compile_context>
chip_gen: v7x
topology: tpu7x:2x2x1
jax: 0.10.0
libtpu: 0.0.40
codegen_flags: <defaults>
</compile_context>

<pallas_src>
import math

import jax
import jax.numpy as jnp
from jax.experimental import pallas as pl
from jax.experimental.pallas import tpu as pltpu

# ---------------- model hyper-parameters (small, consistent with the module) ----
B = 2            # batch
S = 8            # sequence length
H = 32           # hidden size (model.config.hidden_size)
FF = 4 * H       # FFN intermediate size (= 128)
VOCAB = 64
TYPE_VOCAB = 2
MAX_POS = 16
N_CLASSES = 4
LN_EPS = 1e-12
LANE = 128       # lane width used for packed parameter slab & lane-dense output
BS = B * S
DOT_DTYPE = jnp.bfloat16   # MXU operand dtype (accumulation stays f32)

# rows of the packed (1, *) parameter slab (each row zero-padded to LANE lanes)
ROW_BQKV, ROW_B1, ROW_BO, ROW_B2, ROW_BCLS = 0, 1, 2, 3, 4
ROW_G_EMB, ROW_B_EMB, ROW_G1, ROW_BE1, ROW_G2, ROW_BE2 = 5, 6, 7, 8, 9, 10
N_VEC_ROWS = 11


def _layer_norm(v, g, b):
    mu = jnp.mean(v, axis=-1, keepdims=True)
    var = jnp.mean((v - mu) ** 2, axis=-1, keepdims=True)
    return (v - mu) * jax.lax.rsqrt(var + LN_EPS) * g + b


def _gelu(x):
    # tanh approximation of GELU
    # TODO(synk): exact erf-based GELU for bit-parity with torch F.gelu / HF BERT
    c = math.sqrt(2.0 / math.pi)
    return 0.5 * x * (1.0 + jnp.tanh(c * (x + 0.044715 * x * x * x)))


# ---------------- fused kernel: embeddings + encoder layer + pooling head -------
def fused_kernel(ids_ref, tids_ref, mask_ref,
                 word_emb_ref, type_emb_ref, pos_emb_ref,
                 wqkv_ref, wo_ref, w1_ref, w2_ref, wcls_ref, vec_ref,
                 out_ref):
    f32 = jnp.float32

    # ---- packed (1, *) parameters -------------------------------------------
    bqkv = vec_ref[ROW_BQKV:ROW_BQKV + 1, 0:3 * H]
    b1 = vec_ref[ROW_B1:ROW_B1 + 1, 0:FF]
    bo = vec_ref[ROW_BO:ROW_BO + 1, 0:H]
    b2 = vec_ref[ROW_B2:ROW_B2 + 1, 0:H]
    bcls = vec_ref[ROW_BCLS:ROW_BCLS + 1, :]               # padded to LANE
    g_emb = vec_ref[ROW_G_EMB:ROW_G_EMB + 1, 0:H]
    b_emb = vec_ref[ROW_B_EMB:ROW_B_EMB + 1, 0:H]
    g1 = vec_ref[ROW_G1:ROW_G1 + 1, 0:H]
    be1 = vec_ref[ROW_BE1:ROW_BE1 + 1, 0:H]
    g2 = vec_ref[ROW_G2:ROW_G2 + 1, 0:H]
    be2 = vec_ref[ROW_BE2:ROW_BE2 + 1, 0:H]

    # ---- embedding lookup inside the kernel ----------------------------------
    ids = ids_ref[...]                                      # (BS, 1) int32
    onehot = jnp.where(
        jax.lax.broadcasted_iota(jnp.int32, (BS, VOCAB), 1) == ids, 1.0, 0.0
    ).astype(DOT_DTYPE)
    word = jnp.dot(onehot, word_emb_ref[...],
                   preferred_element_type=f32)              # (BS, H)

    tf = tids_ref[...].astype(f32)                          # (BS, 1) in {0, 1}
    t0 = type_emb_ref[0:1, :].astype(f32)
    t1 = type_emb_ref[1:2, :].astype(f32)
    type_part = t0 * (1.0 - tf) + t1 * tf                   # (BS, H)

    x = word + type_part + pos_emb_ref[...].astype(f32)

    # embedding LayerNorm
    x = _layer_norm(x, g_emb, b_emb)

    # ---- self-attention (single head, head_dim = H) --------------------------
    qkv = jnp.dot(x.astype(DOT_DTYPE), wqkv_ref[...],
                  preferred_element_type=f32) + bqkv        # (BS, 3H)
    q = qkv[:, 0:H]
    k = qkv[:, H:2 * H]
    v = qkv[:, 2 * H:3 * H]

    mask = mask_ref[...].astype(f32)                        # (B, S): 1 keep, 0 pad
    scale = 1.0 / math.sqrt(H)
    ctx_rows = []
    for bi in range(B):                                     # B = 2, fully unrolled
        qb = q[bi * S:(bi + 1) * S, :].astype(DOT_DTYPE)
        kb = k[bi * S:(bi + 1) * S, :].astype(DOT_DTYPE)
        vb = v[bi * S:(bi + 1) * S, :].astype(DOT_DTYPE)
        # q @ k^T via contraction of last dims (no materialized transpose)
        sc = jax.lax.dot_general(qb, kb, (((1,), (1,)), ((), ())),
                                 preferred_element_type=f32) * scale   # (S, S)
        sc = sc + (mask[bi:bi + 1, :] - 1.0) * 1e4          # additive key mask (f32)
        sc = sc - jnp.max(sc, axis=-1, keepdims=True)
        p = jnp.exp(sc)
        p = p * pl.reciprocal(jnp.sum(p, axis=-1, keepdims=True), approx=True)
        ctx_rows.append(jnp.dot(p.astype(DOT_DTYPE), vb,
                                preferred_element_type=f32))
    ctx = jnp.concatenate(ctx_rows, axis=0)                 # (BS, H)

    attn_out = jnp.dot(ctx.astype(DOT_DTYPE), wo_ref[...],
                       preferred_element_type=f32) + bo
    h = _layer_norm(x + attn_out, g1, be1)

    # ---- feed-forward ---------------------------------------------------------
    ff = _gelu(jnp.dot(h.astype(DOT_DTYPE), w1_ref[...],
                       preferred_element_type=f32) + b1)
    ff = jnp.dot(ff.astype(DOT_DTYPE), w2_ref[...],
                 preferred_element_type=f32) + b2
    tok = _layer_norm(h + ff, g2, be2)                      # last_hidden_state (BS, H)

    # ---- mean pooling (mask aware) + L2 normalize + classifier ---------------
    pooled_rows = []
    for bi in range(B):
        tb = tok[bi * S:(bi + 1) * S, :]                    # (S, H), f32
        mb = mask[bi:bi + 1, :]                             # (1, S)
        summed = jnp.dot(mb, tb, preferred_element_type=f32)        # (1, H)
        denom = jnp.maximum(jnp.sum(mb, axis=1, keepdims=True), 1e-9)  # clamp(min=1e-9)
        pooled_rows.append(summed / denom)
    pooled = jnp.concatenate(pooled_rows, axis=0)           # (B, H)

    # dropout(p=0.2) is identity in eval mode
    # F.normalize: p=2, dim=1, eps=1e-12
    norm = jnp.sqrt(jnp.sum(pooled * pooled, axis=-1, keepdims=True))
    pooled = pooled / jnp.maximum(norm, 1e-12)

    logits = jnp.dot(pooled.astype(DOT_DTYPE), wcls_ref[...],
                     preferred_element_type=f32) + bcls     # (B, LANE) lane-dense
    out_ref[...] = logits.astype(out_ref.dtype)


# ---------------- wrapper ----------------------------------------------------------
def _full2(shape):
    return pl.BlockSpec(shape, lambda i: (0, 0))


def run_fused(ids, tids, mask, params):
    in_arrays = (ids, tids, mask,
                 params["word_emb"], params["type_emb"], params["pos_emb_tiled"],
                 params["wqkv"], params["wo"], params["w1"], params["w2"],
                 params["wcls"], params["vec"])
    out = pl.pallas_call(
        fused_kernel,
        out_shape=jax.ShapeDtypeStruct((B, LANE), jnp.float32),
        grid=(1,),
        in_specs=[_full2(a.shape) for a in in_arrays],
        out_specs=pl.BlockSpec((B, LANE), lambda i: (0, 0)),
        compiler_params=pltpu.CompilerParams(dimension_semantics=("arbitrary",)),
    )(*in_arrays)
    return out[:, :N_CLASSES]


@jax.jit
def tapt_forward(params, input_ids, token_type_ids, attention_mask):
    ids = input_ids.reshape(BS, 1).astype(jnp.int32)
    tids = token_type_ids.reshape(BS, 1).astype(jnp.int32)
    mask = attention_mask.astype(jnp.float32)               # (B, S)
    return run_fused(ids, tids, mask, params)


# ---------------- deterministic parameter init --------------------------------------
def init_params(key):
    ks = jax.random.split(key, 16)

    def dense(k, fan_in, fan_out):
        w = jax.random.normal(k, (fan_in, fan_out), jnp.float32) * 0.02
        b = jnp.zeros((fan_out,), jnp.float32)
        return w, b

    wq, bq = dense(ks[0], H, H)
    wk, bk = dense(ks[1], H, H)
    wv, bv = dense(ks[2], H, H)
    wo, bo = dense(ks[3], H, H)
    w1, b1 = dense(ks[4], H, FF)
    w2, b2 = dense(ks[5], FF, H)

    # classifier: xavier_uniform_ on weight ([n_classes, hidden] in torch), stored
    # here as [hidden, n_classes] so the kernel computes pooled @ W + b.
    limit = math.sqrt(6.0 / (H + N_CLASSES))
    w_cls = jax.random.uniform(ks[6], (H, N_CLASSES), jnp.float32, -limit, limit)
    b_cls = jax.random.uniform(ks[7], (N_CLASSES,), jnp.float32,
                               -1.0 / math.sqrt(H), 1.0 / math.sqrt(H))

    word_emb = jax.random.normal(ks[8], (VOCAB, H), jnp.float32) * 0.02
    type_emb = jax.random.normal(ks[9], (TYPE_VOCAB, H), jnp.float32) * 0.02
    pos_emb = jax.random.normal(ks[10], (MAX_POS, H), jnp.float32) * 0.02

    g_emb = jnp.ones((H,), jnp.float32)
    b_emb = jnp.zeros((H,), jnp.float32)
    g1 = jnp.ones((H,), jnp.float32)
    be1 = jnp.zeros((H,), jnp.float32)
    g2 = jnp.ones((H,), jnp.float32)
    be2 = jnp.zeros((H,), jnp.float32)

    # ---- pack for the fused kernel (fewer, lane-dense inputs) ----------------
    def row(v):
        v = v.reshape(1, -1)
        return jnp.pad(v, ((0, 0), (0, LANE - v.shape[1])))

    bqkv = jnp.concatenate([bq, bk, bv])                    # (3H,)
    vec = jnp.concatenate(
        [row(bqkv), row(b1), row(bo), row(b2), row(b_cls),
         row(g_emb), row(b_emb), row(g1), row(be1), row(g2), row(be2)],
        axis=0)                                             # (N_VEC_ROWS, LANE)
    assert vec.shape == (N_VEC_ROWS, LANE)

    wqkv = jnp.concatenate([wq, wk, wv], axis=1)            # (H, 3H)
    wcls = jnp.pad(w_cls, ((0, 0), (0, LANE - N_CLASSES)))  # (H, LANE) lane-dense out
    pos_tiled = jnp.tile(pos_emb[:S], (B, 1))               # (BS, H)

    return dict(
        word_emb=word_emb.astype(DOT_DTYPE),
        type_emb=type_emb,
        pos_emb_tiled=pos_tiled,
        wqkv=wqkv.astype(DOT_DTYPE),
        wo=wo.astype(DOT_DTYPE),
        w1=w1.astype(DOT_DTYPE),
        w2=w2.astype(DOT_DTYPE),
        wcls=wcls.astype(DOT_DTYPE),
        vec=vec,
    )


if __name__ == "__main__":
    key = jax.random.PRNGKey(0)
    k_params, k_ids, k_types = jax.random.split(key, 3)

    params = init_params(k_params)

    input_ids = jax.random.randint(k_ids, (B, S), 0, VOCAB, dtype=jnp.int32)
    token_type_ids = jax.random.randint(k_types, (B, S), 0, TYPE_VOCAB, dtype=jnp.int32)
    # deterministic attention mask: last two tokens of the second example are padding
    attention_mask = jnp.array(
        [[1, 1, 1, 1, 1, 1, 1, 1],
         [1, 1, 1, 1, 1, 1, 0, 0]], dtype=jnp.int32)

    logits = tapt_forward(params, input_ids, token_type_ids, attention_mask)
    jax.block_until_ready(logits)
    assert logits.shape == (B, N_CLASSES)
    assert bool(jnp.all(jnp.isfinite(logits)))
    print("KERNEL_OK")
</pallas_src>

<mosaic_0001>
module attributes {stable_mosaic.version = 11 : i64} {
  func.func @fused_kernel(%arg0: i32, %arg1: memref<16x1xi32, #tpu.memory_space<vmem>>, %arg2: memref<16x1xi32, #tpu.memory_space<vmem>>, %arg3: memref<2x8xf32, #tpu.memory_space<vmem>>, %arg4: memref<64x32xbf16, #tpu.memory_space<vmem>>, %arg5: memref<2x32xf32, #tpu.memory_space<vmem>>, %arg6: memref<16x32xf32, #tpu.memory_space<vmem>>, %arg7: memref<32x96xbf16, #tpu.memory_space<vmem>>, %arg8: memref<32x32xbf16, #tpu.memory_space<vmem>>, %arg9: memref<32x128xbf16, #tpu.memory_space<vmem>>, %arg10: memref<128x32xbf16, #tpu.memory_space<vmem>>, %arg11: memref<32x128xbf16, #tpu.memory_space<vmem>>, %arg12: memref<11x128xf32, #tpu.memory_space<vmem>>, %arg13: memref<2x128xf32, #tpu.memory_space<vmem>>) attributes {dimension_semantics = [#tpu.dimension_semantics<arbitrary>], iteration_bounds = array<i64: 1>, scalar_prefetch = 0 : i64, scratch_operands = 0 : i64, tpu.core_type = #tpu.core_type<tc>, window_params = [{pipeline_mode = #tpu.pipeline_mode<synchronous>, transform_indices = @transform_0, window_bounds = array<i64: 16, 1>}, {pipeline_mode = #tpu.pipeline_mode<synchronous>, transform_indices = @transform_1, window_bounds = array<i64: 16, 1>}, {pipeline_mode = #tpu.pipeline_mode<synchronous>, transform_indices = @transform_2, window_bounds = array<i64: 2, 8>}, {pipeline_mode = #tpu.pipeline_mode<synchronous>, transform_indices = @transform_3, window_bounds = array<i64: 64, 32>}, {pipeline_mode = #tpu.pipeline_mode<synchronous>, transform_indices = @transform_4, window_bounds = array<i64: 2, 32>}, {pipeline_mode = #tpu.pipeline_mode<synchronous>, transform_indices = @transform_5, window_bounds = array<i64: 16, 32>}, {pipeline_mode = #tpu.pipeline_mode<synchronous>, transform_indices = @transform_6, window_bounds = array<i64: 32, 96>}, {pipeline_mode = #tpu.pipeline_mode<synchronous>, transform_indices = @transform_7, window_bounds = array<i64: 32, 32>}, {pipeline_mode = #tpu.pipeline_mode<synchronous>, transform_indices = @transform_8, window_bounds = array<i64: 32, 128>}, {pipeline_mode = #tpu.pipeline_mode<synchronous>, transform_indices = @transform_9, window_bounds = array<i64: 128, 32>}, {pipeline_mode = #tpu.pipeline_mode<synchronous>, transform_indices = @transform_10, window_bounds = array<i64: 32, 128>}, {pipeline_mode = #tpu.pipeline_mode<synchronous>, transform_indices = @transform_11, window_bounds = array<i64: 11, 128>}, {pipeline_mode = #tpu.pipeline_mode<synchronous>, transform_indices = @transform_12, window_bounds = array<i64: 2, 128>}]} {
    %c0 = arith.constant 0 : index
    %c0_0 = arith.constant 0 : index
    %0 = vector.load %arg12[%c0, %c0_0] : memref<11x128xf32, #tpu.memory_space<vmem>>, vector<1x96xf32>
    %c1 = arith.constant 1 : index
    %c0_1 = arith.constant 0 : index
    %1 = vector.load %arg12[%c1, %c0_1] : memref<11x128xf32, #tpu.memory_space<vmem>>, vector<1x128xf32>
    %c2 = arith.constant 2 : index
    %c0_2 = arith.constant 0 : index
    %2 = vector.load %arg12[%c2, %c0_2] : memref<11x128xf32, #tpu.memory_space<vmem>>, vector<1x32xf32>
    %c3 = arith.constant 3 : index
    %c0_3 = arith.constant 0 : index
    %3 = vector.load %arg12[%c3, %c0_3] : memref<11x128xf32, #tpu.memory_space<vmem>>, vector<1x32xf32>
    %c4 = arith.constant 4 : index
    %c0_4 = arith.constant 0 : index
    %4 = vector.load %arg12[%c4, %c0_4] : memref<11x128xf32, #tpu.memory_space<vmem>>, vector<1x128xf32>
    %c5 = arith.constant 5 : index
    %c0_5 = arith.constant 0 : index
    %5 = vector.load %arg12[%c5, %c0_5] : memref<11x128xf32, #tpu.memory_space<vmem>>, vector<1x32xf32>
    %c6 = arith.constant 6 : index
    %c0_6 = arith.constant 0 : index
    %6 = vector.load %arg12[%c6, %c0_6] : memref<11x128xf32, #tpu.memory_space<vmem>>, vector<1x32xf32>
    %c7 = arith.constant 7 : index
    %c0_7 = arith.constant 0 : index
    %7 = vector.load %arg12[%c7, %c0_7] : memref<11x128xf32, #tpu.memory_space<vmem>>, vector<1x32xf32>
    %c8 = arith.constant 8 : index
    %c0_8 = arith.constant 0 : index
    %8 = vector.load %arg12[%c8, %c0_8] : memref<11x128xf32, #tpu.memory_space<vmem>>, vector<1x32xf32>
    %c9 = arith.constant 9 : index
    %c0_9 = arith.constant 0 : index
    %9 = vector.load %arg12[%c9, %c0_9] : memref<11x128xf32, #tpu.memory_space<vmem>>, vector<1x32xf32>
    %c10 = arith.constant 10 : index
    %c0_10 = arith.constant 0 : index
    %10 = vector.load %arg12[%c10, %c0_10] : memref<11x128xf32, #tpu.memory_space<vmem>>, vector<1x32xf32>
    %c0_11 = arith.constant 0 : index
    %c0_12 = arith.constant 0 : index
    %11 = vector.load %arg1[%c0_11, %c0_12] : memref<16x1xi32, #tpu.memory_space<vmem>>, vector<16x1xi32>
    %12 = tpu.iota {dimensions = array<i32: 1>} : vector<16x64xi32>
    %13 = vector.broadcast %11 : vector<16x1xi32> to vector<16x64xi32>
    %14 = arith.cmpi eq, %12, %13 : vector<16x64xi32>
    %cst = arith.constant 1.000000e+00 : f32
    %cst_13 = arith.constant 0.000000e+00 : f32
    %15 = vector.broadcast %cst : f32 to vector<16x64xf32>
    %16 = vector.broadcast %cst_13 : f32 to vector<16x64xf32>
    %17 = arith.select %14, %15, %16 : vector<16x64xi1>, vector<16x64xf32>
    %18 = arith.truncf %17 : vector<16x64xf32> to vector<16x64xbf16>
    %c0_14 = arith.constant 0 : index
    %c0_15 = arith.constant 0 : index
    %19 = vector.load %arg4[%c0_14, %c0_15] : memref<64x32xbf16, #tpu.memory_space<vmem>>, vector<64x32xbf16>
    %cst_16 = arith.constant dense<0.000000e+00> : vector<16x32xf32>
    %20 = tpu.matmul %18, %19, %cst_16 {dimension_numbers = #tpu.dot_dimension_numbers<[1], [0], [0], [1], [0, 0, 1, 1], [], []>} : vector<16x64xbf16>, vector<64x32xbf16>, vector<16x32xf32> -> vector<16x32xf32>
    %c0_17 = arith.constant 0 : index
    %c0_18 = arith.constant 0 : index
    %21 = vector.load %arg2[%c0_17, %c0_18] : memref<16x1xi32, #tpu.memory_space<vmem>>, vector<16x1xi32>
    %22 = arith.sitofp %21 : vector<16x1xi32> to vector<16x1xf32>
    %c0_19 = arith.constant 0 : index
    %c0_20 = arith.constant 0 : index
    %23 = vector.load %arg5[%c0_19, %c0_20] : memref<2x32xf32, #tpu.memory_space<vmem>>, vector<1x32xf32>
    %c1_21 = arith.constant 1 : index
    %c0_22 = arith.constant 0 : index
    %24 = vector.load %arg5[%c1_21, %c0_22] : memref<2x32xf32, #tpu.memory_space<vmem>>, vector<1x32xf32>
    %cst_23 = arith.constant 1.000000e+00 : f32
    %25 = vector.broadcast %cst_23 : f32 to vector<16x1xf32>
    %26 = arith.subf %25, %22 : vector<16x1xf32>
    %27 = vector.broadcast %23 : vector<1x32xf32> to vector<16x32xf32>
    %28 = vector.broadcast %26 : vector<16x1xf32> to vector<16x32xf32>
    %29 = arith.mulf %27, %28 : vector<16x32xf32>
    %30 = vector.broadcast %24 : vector<1x32xf32> to vector<16x32xf32>
    %31 = vector.broadcast %22 : vector<16x1xf32> to vector<16x32xf32>
    %32 = arith.mulf %30, %31 : vector<16x32xf32>
    %33 = arith.addf %29, %32 : vector<16x32xf32>
    %34 = arith.addf %20, %33 : vector<16x32xf32>
    %c0_24 = arith.constant 0 : index
    %c0_25 = arith.constant 0 : index
    %35 = vector.load %arg6[%c0_24, %c0_25] : memref<16x32xf32, #tpu.memory_space<vmem>>, vector<16x32xf32>
    %36 = arith.addf %34, %35 : vector<16x32xf32>
    %cst_26 = arith.constant dense<0.000000e+00> : vector<16xf32>
    %37 = vector.multi_reduction <add>, %36, %cst_26 [1] : vector<16x32xf32> to vector<16xf32>
    %38 = vector.shape_cast %37 : vector<16xf32> to vector<16x1xf32>
    %cst_27 = arith.constant 3.200000e+01 : f32
    %39 = vector.broadcast %cst_27 : f32 to vector<16x1xf32>
    %40 = arith.divf %38, %39 : vector<16x1xf32>
    %41 = vector.broadcast %40 : vector<16x1xf32> to vector<16x32xf32>
    %42 = arith.subf %36, %41 : vector<16x32xf32>
    %43 = arith.mulf %42, %42 : vector<16x32xf32>
    %cst_28 = arith.constant dense<0.000000e+00> : vector<16xf32>
    %44 = vector.multi_reduction <add>, %43, %cst_28 [1] : vector<16x32xf32> to vector<16xf32>
    %45 = vector.shape_cast %44 : vector<16xf32> to vector<16x1xf32>
    %cst_29 = arith.constant 3.200000e+01 : f32
    %46 = vector.broadcast %cst_29 : f32 to vector<16x1xf32>
    %47 = arith.divf %45, %46 : vector<16x1xf32>
    %48 = vector.broadcast %40 : vector<16x1xf32> to vector<16x32xf32>
    %49 = arith.subf %36, %48 : vector<16x32xf32>
    %cst_30 = arith.constant 9.99999996E-13 : f32
    %50 = vector.broadcast %cst_30 : f32 to vector<16x1xf32>
    %51 = arith.addf %47, %50 : vector<16x1xf32>
    %52 = math.rsqrt %51 : vector<16x1xf32>
    %53 = vector.broadcast %52 : vector<16x1xf32> to vector<16x32xf32>
    %54 = arith.mulf %49, %53 : vector<16x32xf32>
    %55 = vector.broadcast %5 : vector<1x32xf32> to vector<16x32xf32>
    %56 = arith.mulf %54, %55 : vector<16x32xf32>
    %57 = vector.broadcast %6 : vector<1x32xf32> to vector<16x32xf32>
    %58 = arith.addf %56, %57 : vector<16x32xf32>
    %59 = arith.truncf %58 : vector<16x32xf32> to vector<16x32xbf16>
    %c0_31 = arith.constant 0 : index
    %c0_32 = arith.constant 0 : index
    %60 = vector.load %arg7[%c0_31, %c0_32] : memref<32x96xbf16, #tpu.memory_space<vmem>>, vector<32x96xbf16>
    %cst_33 = arith.constant dense<0.000000e+00> : vector<16x96xf32>
    %61 = tpu.matmul %59, %60, %cst_33 {dimension_numbers = #tpu.dot_dimension_numbers<[1], [0], [0], [1], [0, 0, 1, 1], [], []>} : vector<16x32xbf16>, vector<32x96xbf16>, vector<16x96xf32> -> vector<16x96xf32>
    %62 = vector.broadcast %0 : vector<1x96xf32> to vector<16x96xf32>
    %63 = arith.addf %61, %62 : vector<16x96xf32>
    %64 = vector.extract_strided_slice %63 {offsets = [0, 0], sizes = [16, 32], strides = [1, 1]} : vector<16x96xf32> to vector<16x32xf32>
    %65 = vector.extract_strided_slice %63 {offsets = [0, 32], sizes = [16, 32], strides = [1, 1]} : vector<16x96xf32> to vector<16x32xf32>
    %66 = vector.extract_strided_slice %63 {offsets = [0, 64], sizes = [16, 32], strides = [1, 1]} : vector<16x96xf32> to vector<16x32xf32>
    %c0_34 = arith.constant 0 : index
    %c0_35 = arith.constant 0 : index
    %67 = vector.load %arg3[%c0_34, %c0_35] : memref<2x8xf32, #tpu.memory_space<vmem>>, vector<2x8xf32>
    %68 = vector.extract_strided_slice %64 {offsets = [0, 0], sizes = [8, 32], strides = [1, 1]} : vector<16x32xf32> to vector<8x32xf32>
    %69 = arith.truncf %68 : vector<8x32xf32> to vector<8x32xbf16>
    %70 = vector.extract_strided_slice %65 {offsets = [0, 0], sizes = [8, 32], strides = [1, 1]} : vector<16x32xf32> to vector<8x32xf32>
    %71 = arith.truncf %70 : vector<8x32xf32> to vector<8x32xbf16>
    %72 = vector.extract_strided_slice %66 {offsets = [0, 0], sizes = [8, 32], strides = [1, 1]} : vector<16x32xf32> to vector<8x32xf32>
    %73 = arith.truncf %72 : vector<8x32xf32> to vector<8x32xbf16>
    %cst_36 = arith.constant dense<0.000000e+00> : vector<8x8xf32>
    %74 = tpu.matmul %69, %71, %cst_36 {dimension_numbers = #tpu.dot_dimension_numbers<[1], [1], [0], [0], [0, 0, 1, 0], [], []>} : vector<8x32xbf16>, vector<8x32xbf16>, vector<8x8xf32> -> vector<8x8xf32>
    %cst_37 = arith.constant 0.176776692 : f32
    %75 = vector.broadcast %cst_37 : f32 to vector<8x8xf32>
    %76 = arith.mulf %74, %75 : vector<8x8xf32>
    %77 = vector.extract_strided_slice %67 {offsets = [0, 0], sizes = [1, 8], strides = [1, 1]} : vector<2x8xf32> to vector<1x8xf32>
    %cst_38 = arith.constant 1.000000e+00 : f32
    %78 = vector.broadcast %cst_38 : f32 to vector<1x8xf32>
    %79 = arith.subf %77, %78 : vector<1x8xf32>
    %cst_39 = arith.constant 1.000000e+04 : f32
    %80 = vector.broadcast %cst_39 : f32 to vector<1x8xf32>
    %81 = arith.mulf %79, %80 : vector<1x8xf32>
    %82 = vector.broadcast %81 : vector<1x8xf32> to vector<8x8xf32>
    %83 = arith.addf %76, %82 : vector<8x8xf32>
    %cst_40 = arith.constant dense<0xFF800000> : vector<8xf32>
    %84 = vector.multi_reduction <maximumf>, %83, %cst_40 [1] : vector<8x8xf32> to vector<8xf32>
    %85 = vector.shape_cast %84 : vector<8xf32> to vector<8x1xf32>
    %86 = vector.broadcast %85 : vector<8x1xf32> to vector<8x8xf32>
    %87 = arith.subf %83, %86 : vector<8x8xf32>
    %88 = math.exp %87 : vector<8x8xf32>
    %cst_41 = arith.constant dense<0.000000e+00> : vector<8xf32>
    %89 = vector.multi_reduction <add>, %88, %cst_41 [1] : vector<8x8xf32> to vector<8xf32>
    %90 = vector.shape_cast %89 : vector<8xf32> to vector<8x1xf32>
    %91 = tpu.reciprocal %90 {approx = true} : vector<8x1xf32> -> vector<8x1xf32>
    %92 = vector.broadcast %91 : vector<8x1xf32> to vector<8x8xf32>
    %93 = arith.mulf %88, %92 : vector<8x8xf32>
    %94 = arith.truncf %93 : vector<8x8xf32> to vector<8x8xbf16>
    %cst_42 = arith.constant dense<0.000000e+00> : vector<8x32xf32>
    %95 = tpu.matmul %94, %73, %cst_42 {dimension_numbers = #tpu.dot_dimension_numbers<[1], [0], [0], [1], [0, 0, 1, 1], [], []>} : vector<8x8xbf16>, vector<8x32xbf16>, vector<8x32xf32> -> vector<8x32xf32>
    %96 = vector.extract_strided_slice %64 {offsets = [8, 0], sizes = [8, 32], strides = [1, 1]} : vector<16x32xf32> to vector<8x32xf32>
    %97 = arith.truncf %96 : vector<8x32xf32> to vector<8x32xbf16>
    %98 = vector.extract_strided_slice %65 {offsets = [8, 0], sizes = [8, 32], strides = [1, 1]} : vector<16x32xf32> to vector<8x32xf32>
    %99 = arith.truncf %98 : vector<8x32xf32> to vector<8x32xbf16>
    %100 = vector.extract_strided_slice %66 {offsets = [8, 0], sizes = [8, 32], strides = [1, 1]} : vector<16x32xf32> to vector<8x32xf32>
    %101 = arith.truncf %100 : vector<8x32xf32> to vector<8x32xbf16>
    %cst_43 = arith.constant dense<0.000000e+00> : vector<8x8xf32>
    %102 = tpu.matmul %97, %99, %cst_43 {dimension_numbers = #tpu.dot_dimension_numbers<[1], [1], [0], [0], [0, 0, 1, 0], [], []>} : vector<8x32xbf16>, vector<8x32xbf16>, vector<8x8xf32> -> vector<8x8xf32>
    %cst_44 = arith.constant 0.176776692 : f32
    %103 = vector.broadcast %cst_44 : f32 to vector<8x8xf32>
    %104 = arith.mulf %102, %103 : vector<8x8xf32>
    %105 = vector.extract_strided_slice %67 {offsets = [1, 0], sizes = [1, 8], strides = [1, 1]} : vector<2x8xf32> to vector<1x8xf32>
    %cst_45 = arith.constant 1.000000e+00 : f32
    %106 = vector.broadcast %cst_45 : f32 to vector<1x8xf32>
    %107 = arith.subf %105, %106 : vector<1x8xf32>
    %cst_46 = arith.constant 1.000000e+04 : f32
    %108 = vector.broadcast %cst_46 : f32 to vector<1x8xf32>
    %109 = arith.mulf %107, %108 : vector<1x8xf32>
    %110 = vector.broadcast %109 : vector<1x8xf32> to vector<8x8xf32>
    %111 = arith.addf %104, %110 : vector<8x8xf32>
    %cst_47 = arith.constant dense<0xFF800000> : vector<8xf32>
    %112 = vector.multi_reduction <maximumf>, %111, %cst_47 [1] : vector<8x8xf32> to vector<8xf32>
    %113 = vector.shape_cast %112 : vector<8xf32> to vector<8x1xf32>
    %114 = vector.broadcast %113 : vector<8x1xf32> to vector<8x8xf32>
    %115 = arith.subf %111, %114 : vector<8x8xf32>
    %116 = math.exp %115 : vector<8x8xf32>
    %cst_48 = arith.constant dense<0.000000e+00> : vector<8xf32>
    %117 = vector.multi_reduction <add>, %116, %cst_48 [1] : vector<8x8xf32> to vector<8xf32>
    %118 = vector.shape_cast %117 : vector<8xf32> to vector<8x1xf32>
    %119 = tpu.reciprocal %118 {approx = true} : vector<8x1xf32> -> vector<8x1xf32>
    %120 = vector.broadcast %119 : vector<8x1xf32> to vector<8x8xf32>
    %121 = arith.mulf %116, %120 : vector<8x8xf32>
    %122 = arith.truncf %121 : vector<8x8xf32> to vector<8x8xbf16>
    %cst_49 = arith.constant dense<0.000000e+00> : vector<8x32xf32>
    %123 = tpu.matmul %122, %101, %cst_49 {dimension_numbers = #tpu.dot_dimension_numbers<[1], [0], [0], [1], [0, 0, 1, 1], [], []>} : vector<8x8xbf16>, vector<8x32xbf16>, vector<8x32xf32> -> vector<8x32xf32>
    %124 = tpu.concatenate %95, %123 in 0 : vector<8x32xf32>, vector<8x32xf32> -> vector<16x32xf32>
    %125 = arith.truncf %124 : vector<16x32xf32> to vector<16x32xbf16>
    %c0_50 = arith.constant 0 : index
    %c0_51 = arith.constant 0 : index
    %126 = vector.load %arg8[%c0_50, %c0_51] : memref<32x32xbf16, #tpu.memory_space<vmem>>, vector<32x32xbf16>
    %cst_52 = arith.constant dense<0.000000e+00> : vector<16x32xf32>
    %127 = tpu.matmul %125, %126, %cst_52 {dimension_numbers = #tpu.dot_dimension_numbers<[1], [0], [0], [1], [0, 0, 1, 1], [], []>} : vector<16x32xbf16>, vector<32x32xbf16>, vector<16x32xf32> -> vector<16x32xf32>
    %128 = vector.broadcast %2 : vector<1x32xf32> to vector<16x32xf32>
    %129 = arith.addf %127, %128 : vector<16x32xf32>
    %130 = arith.addf %58, %129 : vector<16x32xf32>
    %cst_53 = arith.constant dense<0.000000e+00> : vector<16xf32>
    %131 = vector.multi_reduction <add>, %130, %cst_53 [1] : vector<16x32xf32> to vector<16xf32>
    %132 = vector.shape_cast %131 : vector<16xf32> to vector<16x1xf32>
    %cst_54 = arith.constant 3.200000e+01 : f32
    %133 = vector.broadcast %cst_54 : f32 to vector<16x1xf32>
    %134 = arith.divf %132, %133 : vector<16x1xf32>
    %135 = vector.broadcast %134 : vector<16x1xf32> to vector<16x32xf32>
    %136 = arith.subf %130, %135 : vector<16x32xf32>
    %137 = arith.mulf %136, %136 : vector<16x32xf32>
    %cst_55 = arith.constant dense<0.000000e+00> : vector<16xf32>
    %138 = vector.multi_reduction <add>, %137, %cst_55 [1] : vector<16x32xf32> to vector<16xf32>
    %139 = vector.shape_cast %138 : vector<16xf32> to vector<16x1xf32>
    %cst_56 = arith.constant 3.200000e+01 : f32
    %140 = vector.broadcast %cst_56 : f32 to vector<16x1xf32>
    %141 = arith.divf %139, %140 : vector<16x1xf32>
    %142 = vector.broadcast %134 : vector<16x1xf32> to vector<16x32xf32>
    %143 = arith.subf %130, %142 : vector<16x32xf32>
    %cst_57 = arith.constant 9.99999996E-13 : f32
    %144 = vector.broadcast %cst_57 : f32 to vector<16x1xf32>
    %145 = arith.addf %141, %144 : vector<16x1xf32>
    %146 = math.rsqrt %145 : vector<16x1xf32>
    %147 = vector.broadcast %146 : vector<16x1xf32> to vector<16x32xf32>
    %148 = arith.mulf %143, %147 : vector<16x32xf32>
    %149 = vector.broadcast %7 : vector<1x32xf32> to vector<16x32xf32>
    %150 = arith.mulf %148, %149 : vector<16x32xf32>
    %151 = vector.broadcast %8 : vector<1x32xf32> to vector<16x32xf32>
    %152 = arith.addf %150, %151 : vector<16x32xf32>
    %153 = arith.truncf %152 : vector<16x32xf32> to vector<16x32xbf16>
    %c0_58 = arith.constant 0 : index
    %c0_59 = arith.constant 0 : index
    %154 = vector.load %arg9[%c0_58, %c0_59] : memref<32x128xbf16, #tpu.memory_space<vmem>>, vector<32x128xbf16>
    %cst_60 = arith.constant dense<0.000000e+00> : vector<16x128xf32>
    %155 = tpu.matmul %153, %154, %cst_60 {dimension_numbers = #tpu.dot_dimension_numbers<[1], [0], [0], [1], [0, 0, 1, 1], [], []>} : vector<16x32xbf16>, vector<32x128xbf16>, vector<16x128xf32> -> vector<16x128xf32>
    %156 = vector.broadcast %1 : vector<1x128xf32> to vector<16x128xf32>
    %157 = arith.addf %155, %156 : vector<16x128xf32>
    %cst_61 = arith.constant 5.000000e-01 : f32
    %158 = vector.broadcast %cst_61 : f32 to vector<16x128xf32>
    %159 = arith.mulf %158, %157 : vector<16x128xf32>
    %cst_62 = arith.constant 4.471500e-02 : f32
    %160 = vector.broadcast %cst_62 : f32 to vector<16x128xf32>
    %161 = arith.mulf %160, %157 : vector<16x128xf32>
    %162 = arith.mulf %161, %157 : vector<16x128xf32>
    %163 = arith.mulf %162, %157 : vector<16x128xf32>
    %164 = arith.addf %157, %163 : vector<16x128xf32>
    %cst_63 = arith.constant 0.797884583 : f32
    %165 = vector.broadcast %cst_63 : f32 to vector<16x128xf32>
    %166 = arith.mulf %165, %164 : vector<16x128xf32>
    %167 = math.tanh %166 : vector<16x128xf32>
    %cst_64 = arith.constant 1.000000e+00 : f32
    %168 = vector.broadcast %cst_64 : f32 to vector<16x128xf32>
    %169 = arith.addf %168, %167 : vector<16x128xf32>
    %170 = arith.mulf %159, %169 : vector<16x128xf32>
    %171 = arith.truncf %170 : vector<16x128xf32> to vector<16x128xbf16>
    %c0_65 = arith.constant 0 : index
    %c0_66 = arith.constant 0 : index
    %172 = vector.load %arg10[%c0_65, %c0_66] : memref<128x32xbf16, #tpu.memory_space<vmem>>, vector<128x32xbf16>
    %cst_67 = arith.constant dense<0.000000e+00> : vector<16x32xf32>
    %173 = tpu.matmul %171, %172, %cst_67 {dimension_numbers = #tpu.dot_dimension_numbers<[1], [0], [0], [1], [0, 0, 1, 1], [], []>} : vector<16x128xbf16>, vector<128x32xbf16>, vector<16x32xf32> -> vector<16x32xf32>
    %174 = vector.broadcast %3 : vector<1x32xf32> to vector<16x32xf32>
    %175 = arith.addf %173, %174 : vector<16x32xf32>
    %176 = arith.addf %152, %175 : vector<16x32xf32>
    %cst_68 = arith.constant dense<0.000000e+00> : vector<16xf32>
    %177 = vector.multi_reduction <add>, %176, %cst_68 [1] : vector<16x32xf32> to vector<16xf32>
    %178 = vector.shape_cast %177 : vector<16xf32> to vector<16x1xf32>
    %cst_69 = arith.constant 3.200000e+01 : f32
    %179 = vector.broadcast %cst_69 : f32 to vector<16x1xf32>
    %180 = arith.divf %178, %179 : vector<16x1xf32>
    %181 = vector.broadcast %180 : vector<16x1xf32> to vector<16x32xf32>
    %182 = arith.subf %176, %181 : vector<16x32xf32>
    %183 = arith.mulf %182, %182 : vector<16x32xf32>
    %cst_70 = arith.constant dense<0.000000e+00> : vector<16xf32>
    %184 = vector.multi_reduction <add>, %183, %cst_70 [1] : vector<16x32xf32> to vector<16xf32>
    %185 = vector.shape_cast %184 : vector<16xf32> to vector<16x1xf32>
    %cst_71 = arith.constant 3.200000e+01 : f32
    %186 = vector.broadcast %cst_71 : f32 to vector<16x1xf32>
    %187 = arith.divf %185, %186 : vector<16x1xf32>
    %188 = vector.broadcast %180 : vector<16x1xf32> to vector<16x32xf32>
    %189 = arith.subf %176, %188 : vector<16x32xf32>
    %cst_72 = arith.constant 9.99999996E-13 : f32
    %190 = vector.broadcast %cst_72 : f32 to vector<16x1xf32>
    %191 = arith.addf %187, %190 : vector<16x1xf32>
    %192 = math.rsqrt %191 : vector<16x1xf32>
    %193 = vector.broadcast %192 : vector<16x1xf32> to vector<16x32xf32>
    %194 = arith.mulf %189, %193 : vector<16x32xf32>
    %195 = vector.broadcast %9 : vector<1x32xf32> to vector<16x32xf32>
    %196 = arith.mulf %194, %195 : vector<16x32xf32>
    %197 = vector.broadcast %10 : vector<1x32xf32> to vector<16x32xf32>
    %198 = arith.addf %196, %197 : vector<16x32xf32>
    %199 = vector.extract_strided_slice %198 {offsets = [0, 0], sizes = [8, 32], strides = [1, 1]} : vector<16x32xf32> to vector<8x32xf32>
    %200 = vector.extract_strided_slice %67 {offsets = [0, 0], sizes = [1, 8], strides = [1, 1]} : vector<2x8xf32> to vector<1x8xf32>
    %cst_73 = arith.constant dense<0.000000e+00> : vector<1x32xf32>
    %201 = tpu.matmul %200, %199, %cst_73 {dimension_numbers = #tpu.dot_dimension_numbers<[1], [0], [0], [1], [0, 0, 1, 1], [], []>} : vector<1x8xf32>, vector<8x32xf32>, vector<1x32xf32> -> vector<1x32xf32>
    %cst_74 = arith.constant dense<0.000000e+00> : vector<1xf32>
    %202 = vector.multi_reduction <add>, %200, %cst_74 [1] : vector<1x8xf32> to vector<1xf32>
    %203 = vector.shape_cast %202 : vector<1xf32> to vector<1x1xf32>
    %cst_75 = arith.constant 9.99999971E-10 : f32
    %204 = vector.broadcast %cst_75 : f32 to vector<1x1xf32>
    %205 = arith.maximumf %203, %204 : vector<1x1xf32>
    %206 = vector.broadcast %205 : vector<1x1xf32> to vector<1x32xf32>
    %207 = arith.divf %201, %206 : vector<1x32xf32>
    %208 = vector.extract_strided_slice %198 {offsets = [8, 0], sizes = [8, 32], strides = [1, 1]} : vector<16x32xf32> to vector<8x32xf32>
    %209 = vector.extract_strided_slice %67 {offsets = [1, 0], sizes = [1, 8], strides = [1, 1]} : vector<2x8xf32> to vector<1x8xf32>
    %cst_76 = arith.constant dense<0.000000e+00> : vector<1x32xf32>
    %210 = tpu.matmul %209, %208, %cst_76 {dimension_numbers = #tpu.dot_dimension_numbers<[1], [0], [0], [1], [0, 0, 1, 1], [], []>} : vector<1x8xf32>, vector<8x32xf32>, vector<1x32xf32> -> vector<1x32xf32>
    %cst_77 = arith.constant dense<0.000000e+00> : vector<1xf32>
    %211 = vector.multi_reduction <add>, %209, %cst_77 [1] : vector<1x8xf32> to vector<1xf32>
    %212 = vector.shape_cast %211 : vector<1xf32> to vector<1x1xf32>
    %cst_78 = arith.constant 9.99999971E-10 : f32
    %213 = vector.broadcast %cst_78 : f32 to vector<1x1xf32>
    %214 = arith.maximumf %212, %213 : vector<1x1xf32>
    %215 = vector.broadcast %214 : vector<1x1xf32> to vector<1x32xf32>
    %216 = arith.divf %210, %215 : vector<1x32xf32>
    %217 = tpu.concatenate %207, %216 in 0 : vector<1x32xf32>, vector<1x32xf32> -> vector<2x32xf32>
    %218 = arith.mulf %217, %217 : vector<2x32xf32>
    %cst_79 = arith.constant dense<0.000000e+00> : vector<2xf32>
    %219 = vector.multi_reduction <add>, %218, %cst_79 [1] : vector<2x32xf32> to vector<2xf32>
    %220 = vector.shape_cast %219 : vector<2xf32> to vector<2x1xf32>
    %221 = math.sqrt %220 : vector<2x1xf32>
    %cst_80 = arith.constant 9.99999996E-13 : f32
    %222 = vector.broadcast %cst_80 : f32 to vector<2x1xf32>
    %223 = arith.maximumf %221, %222 : vector<2x1xf32>
    %224 = vector.broadcast %223 : vector<2x1xf32> to vector<2x32xf32>
    %225 = arith.divf %217, %224 : vector<2x32xf32>
    %226 = arith.truncf %225 : vector<2x32xf32> to vector<2x32xbf16>
    %c0_81 = arith.constant 0 : index
    %c0_82 = arith.constant 0 : index
    %227 = vector.load %arg11[%c0_81, %c0_82] : memref<32x128xbf16, #tpu.memory_space<vmem>>, vector<32x128xbf16>
    %cst_83 = arith.constant dense<0.000000e+00> : vector<2x128xf32>
    %228 = tpu.matmul %226, %227, %cst_83 {dimension_numbers = #tpu.dot_dimension_numbers<[1], [0], [0], [1], [0, 0, 1, 1], [], []>} : vector<2x32xbf16>, vector<32x128xbf16>, vector<2x128xf32> -> vector<2x128xf32>
    %229 = vector.broadcast %4 : vector<1x128xf32> to vector<2x128xf32>
    %230 = arith.addf %228, %229 : vector<2x128xf32>
    %c0_84 = arith.constant 0 : index
    %c0_85 = arith.constant 0 : index
    %231 = vector.load %arg13[%c0_84, %c0_85] : memref<2x128xf32, #tpu.memory_space<vmem>>, vector<2x128xf32>
    tpu.vector_store %arg13[%c0_84, %c0_85], %230 {strides = array<i32>} : memref<2x128xf32, #tpu.memory_space<vmem>>, vector<2x128xf32>,
    return
  }
  func.func @transform_0(%arg0: i32) -> (i32, i32) {
    %c0_i32 = arith.constant 0 : i32
    %c0_i32_0 = arith.constant 0 : i32
    %c0_i32_1 = arith.constant 0 : i32
    return %c0_i32, %c0_i32_0 : i32, i32
  }
  func.func @transform_1(%arg0: i32) -> (i32, i32) {
    %c0_i32 = arith.constant 0 : i32
    %c0_i32_0 = arith.constant 0 : i32
    %c0_i32_1 = arith.constant 0 : i32
    return %c0_i32, %c0_i32_0 : i32, i32
  }
  func.func @transform_2(%arg0: i32) -> (i32, i32) {
    %c0_i32 = arith.constant 0 : i32
    %c0_i32_0 = arith.constant 0 : i32
    %c0_i32_1 = arith.constant 0 : i32
    return %c0_i32, %c0_i32_0 : i32, i32
  }
  func.func @transform_3(%arg0: i32) -> (i32, i32) {
    %c0_i32 = arith.constant 0 : i32
    %c0_i32_0 = arith.constant 0 : i32
    %c0_i32_1 = arith.constant 0 : i32
    return %c0_i32, %c0_i32_0 : i32, i32
  }
  func.func @transform_4(%arg0: i32) -> (i32, i32) {
    %c0_i32 = arith.constant 0 : i32
    %c0_i32_0 = arith.constant 0 : i32
    %c0_i32_1 = arith.constant 0 : i32
    return %c0_i32, %c0_i32_0 : i32, i32
  }
  func.func @transform_5(%arg0: i32) -> (i32, i32) {
    %c0_i32 = arith.constant 0 : i32
    %c0_i32_0 = arith.constant 0 : i32
    %c0_i32_1 = arith.constant 0 : i32
    return %c0_i32, %c0_i32_0 : i32, i32
  }
  func.func @transform_6(%arg0: i32) -> (i32, i32) {
    %c0_i32 = arith.constant 0 : i32
    %c0_i32_0 = arith.constant 0 : i32
    %c0_i32_1 = arith.constant 0 : i32
    return %c0_i32, %c0_i32_0 : i32, i32
  }
  func.func @transform_7(%arg0: i32) -> (i32, i32) {
    %c0_i32 = arith.constant 0 : i32
    %c0_i32_0 = arith.constant 0 : i32
    %c0_i32_1 = arith.constant 0 : i32
    return %c0_i32, %c0_i32_0 : i32, i32
  }
  func.func @transform_8(%arg0: i32) -> (i32, i32) {
    %c0_i32 = arith.constant 0 : i32
    %c0_i32_0 = arith.constant 0 : i32
    %c0_i32_1 = arith.constant 0 : i32
    return %c0_i32, %c0_i32_0 : i32, i32
  }
  func.func @transform_9(%arg0: i32) -> (i32, i32) {
    %c0_i32 = arith.constant 0 : i32
    %c0_i32_0 = arith.constant 0 : i32
    %c0_i32_1 = arith.constant 0 : i32
    return %c0_i32, %c0_i32_0 : i32, i32
  }
  func.func @transform_10(%arg0: i32) -> (i32, i32) {
    %c0_i32 = arith.constant 0 : i32
    %c0_i32_0 = arith.constant 0 : i32
    %c0_i32_1 = arith.constant 0 : i32
    return %c0_i32, %c0_i32_0 : i32, i32
  }
  func.func @transform_11(%arg0: i32) -> (i32, i32) {
    %c0_i32 = arith.constant 0 : i32
    %c0_i32_0 = arith.constant 0 : i32
    %c0_i32_1 = arith.constant 0 : i32
    return %c0_i32, %c0_i32_0 : i32, i32
  }
  func.func @transform_12(%arg0: i32) -> (i32, i32) {
    %c0_i32 = arith.constant 0 : i32
    %c0_i32_0 = arith.constant 0 : i32
    %c0_i32_1 = arith.constant 0 : i32
    return %c0_i32, %c0_i32_0 : i32, i32
  }
}

</mosaic_0001>

<bundles_post_ra>
// kernel: tapt_forward.1
= control target key start
LH: loop header
LB: loop body
LE: loop exit
PB: predicated region body
PF: predicated region fallthrough
CT: control target
= control target key end

     0   :  { %v1399_v2 = vmov 0   ;;  %v1400_v6 = vmov 0.0   ;;  %vm1401_vm0 = vmmov 0   ;;  %s1707_s0 = inlined_call_operand.vmem [shape: s32[16,1], index: 0, kind: input, shape index: {}]   ;;  %s1708_s1 = inlined_call_operand.vmem [shape: s32[16,1], index: 1, kind: input, shape index: {}]   ;;  %s1709_s2 = inlined_call_operand.vmem [shape: f32[2,8], index: 2, kind: input, shape index: {}]   ;;  %s1710_s3 = inlined_call_operand.vmem [shape: bf16[64,32], index: 3, kind: input, shape index: {}]   ;;  %s1711_s4 = inlined_call_operand.vmem [shape: f32[2,32], index: 4, kind: input, shape index: {}]   ;;  %s1712_s5 = inlined_call_operand.vmem [shape: f32[16,32], index: 5, kind: input, shape index: {}]   ;;  %s1713_s6 = inlined_call_operand.vmem [shape: bf16[32,96], index: 6, kind: input, shape index: {}]   ;;  %s1714_s7 = inlined_call_operand.vmem [shape: bf16[32,32], index: 7, kind: input, shape index: {}]   ;;  %s1715_s8 = inlined_call_operand.vmem [shape: bf16[32,128], index: 8, kind: input, shape index: {}]   ;;  %s1716_s9 = inlined_call_operand.vmem [shape: bf16[128,32], index: 9, kind: input, shape index: {}]   ;;  %s1717_s10 = inlined_call_operand.vmem [shape: bf16[32,128], index: 10, kind: input, shape index: {}]   ;;  %s1718_s11 = inlined_call_operand.vmem [shape: f32[11,128], index: 11, kind: input, shape index: {}]   ;;  %s1719_s12 = inlined_call_operand.hbm [shape: f32[2,128], index: 12, kind: output, shape index: {}]  }
   0x1   :  { %v54_v0 = vld [vmem:[%s1707_s0] sm:$0xff]  ;;  %1321 = vset.pattern.permute.xlu0 %v1399_v2  ;;  %1322 = vset.pattern.permute.xlu1 %v1399_v2  ;;  %v55_v5 = vld [vmem:[%s1707_s0 + $0x8] sm:$0xff]  ;;  %v1325_v9 = vld [vmem:[%s1710_s3 + $0x10] sm:$0xff]  }
   0x2   :  { %v77_v1 = vld [vmem:[%s1708_s1] sm:$0xff]  ;;  %59 = vperm.xlu0 %1321, %v54_v0   ;;  %1217 = vmatprep.subr.bf16.mxu0 %v1400_v6  ;;  %v1324_v8 = vld [vmem:[%s1710_s3 + $0x8] sm:$0xff]   ;;  %v1326_v10 = vld [vmem:[%s1710_s3 + $0x18] sm:$0xff]  }
   0x3   :  { %v79_v3 = vcvt.s32.f32 %v77_v1  ;;  %v1323_v4 = vld [vmem:[%s1710_s3] sm:$0xff]   ;;  %1229 = vmatprep.subr.bf16.mxu1 %v1400_v6  ;;  %1225 = vmatprep.mubr.msk.bf16.mxu0 %vm1401_vm0, %v1400_v6  ;;  %v78_v11 = vld [vmem:[%s1708_s1 + $0x8] sm:$0xff] }
   0x4   :  { %1218 = vmatpush3.bf16.msra.mxu0 %v1323_v4  ;;  %1233 = vmatprep.mubr.msk.bf16.mxu1 %vm1401_vm0, %v1400_v6  ;;  %v80_v12 = vcvt.s32.f32 %v78_v11 }
   0x5   :  { %v83_v7 = vsub.f32 1.0, %v79_v3  ;;  %1219 = vmatprep.subr.bf16.mxu0 %v1400_v6 }
   0x6   :  { %62 = vperm.xlu0 %1321, %v55_v5   ;;  %v84_v13 = vsub.f32 1.0, %v80_v12 }
   0x7   :  { %91 = vperm.xlu1 %1322, %v83_v7  }
   0x8   :  { %1220 = vmatpush3.bf16.msra.mxu0 %v1324_v8 }
   0x9   :  { %1221 = vmatprep.subr.bf16.mxu0 %v1400_v6 }
   0xa   :  { %107 = vperm.xlu0 %1321, %v79_v3  }
   0xb   :  { %96 = vperm.xlu1 %1322, %v84_v13  }
   0xc   :  { %1222 = vmatpush3.bf16.msra.mxu0 %v1325_v9 }
   0xd   :  { %1223 = vmatprep.subr.bf16.mxu0 %v1400_v6 }
  0x10   :  { %1224 = vmatpush3.bf16.msra.mxu0 %v1326_v10 }
  0x11   :  { %1243 = vmatprep.subr.bf16.mxu0 %v1400_v6 }
  0x12   :  { %17 = vsyncpa [#allocation3], 0  ;;  %112 = vperm.xlu1 %1322, %v80_v12   ;;  %v56_v14 = vlaneseq  ;;  %vm143_vm3 = vcmask 523264   ;;  %v1134_v23 = vld [vmem:[%s1711_s4] ss:$0 sm:$0xff]  ;;  %vm192_vm4 = vcmask 261120  }
  0x13   :  { %v1135_v24 = vld [vmem:[%s1711_s4 + $0x1] ss:$0 sm:$0xff]  ;;  %v189_v38 = vld [vmem:[%s1712_s5 + $0x8] sm:$0xff]  ;;  %v1141_v1 = vld [vmem:[%s1718_s11 + $0x5] ss:$0 sm:$0xff]  ;;  %s1402_s13 = smov 96  }
  0x14   :  { %v57_v15 = vand.u32 127, %v56_v14  ;;  %v188_v33 = vld [vmem:[%s1712_s5] sm:$0xff]  ;;  %v1328_v56 = vld [vmem:[%s1713_s6 + $0x8] sm:$0xff]   ;;  %vm356_vm5 = vcmask 64512   ;;  %vm374_vm6 = vcmask 1043456   ;;  %vm1025_vm7 = vcmask 58369  }
  0x15   :  { %v1327_v55 = vld [vmem:[%s1713_s6] sm:$0xff]   ;;  %vm945_vm8 = vcmask 57344   ;;  %vm1038_vm9 = vcmask 1040384   ;;  %vm1041_vm10 = vcmask 254976   ;;  %s1404_s24 = smov [#allocation2]  }
  0x16   :  { %1230 = vmatpush3.bf16.msra.mxu1 %v1327_v55  ;;  %v1142_v5 = vld [vmem:[%s1718_s11 + $0x6] ss:$0 sm:$0xff]  ;;  %v1143_v11 = vld [vmem:[%s1718_s11] ss:$0 sm:$0xff]  ;;  %s1126_s25 = sshll.u32 %s1404_s24, 4  ;;  %s1127_s25 = int_to_ptr.vmem [resolvable:$true] %s1126_s25 }
  0x17   :  { %1231 = vmatprep.subr.bf16.mxu1 %v1400_v6  ;;  %s1375_s26 = scalar_lea.vmem %s1127_s25, 32  ;;  %p1380_p1 = scmp.lt.s32.totalorder %s1127_s25, %s1127_s25 }
  0x18   :  { %p1376_p0 = scmp.ne.s32.totalorder %s1127_s25, %s1375_s26  ;;  %p1381_p2 = scmp.lt.s32.totalorder %s1375_s26, %s1375_s26 }
  0x1a   :  { %1232 = vmatpush3.bf16.msra.mxu1 %v1328_v56  ;;  %p1382_p3 = por %p1381_p2, %p1380_p1 }
  0x1b   :  { %1237 = vmatprep.subr.bf16.mxu1 %v1400_v6 }
  0x1c   :  { %p1383_p4 = pnand %p1382_p3, %p1376_p0 }
  0x81   :  { %v60_v16 = vpop.permute.xlu0 %59 }
  0x82   :  { %vm64_vm1 = vcmp.eq.s32.totalorder %v57_v15, %v60_v16 }
  0x83   :  { %v66_v18 = vsel %vm64_vm1, 1.0, %v1400_v6 }
  0x85   :  { %v63_v17 = vpop.permute.xlu0 %62 }
  0x86   :  { %vm65_vm2 = vcmp.eq.s32.totalorder %v57_v15, %v63_v17  ;;  %v92_v21 = vpop.permute.xlu1 %91 }
  0x87   :  { %v67_v19 = vsel %vm65_vm2, 1.0, %v1400_v6  ;;  %v99_v27 = vmul.f32 %v1134_v23, %v92_v21 }
  0x88   :  { %v68_v20 = vpack.c.bf16 %v67_v19, %v66_v18 }
  0x89   :  { %v108_v25 = vpop.permute.xlu0 %107 }
  0x8a   :  { %1226 = vmatmul.mubr.msk.bf16.vlgmr.msra.gmra.mrb[0].mxu0 %vm143_vm3, %v68_v20  ;;  %v97_v22 = vpop.permute.xlu1 %96  ;;  %v115_v28 = vmul.f32 %v1135_v24, %v108_v25  ;;  %v1564_v25 = vld [vmem:[%s1709_s2] sm:$0x3]  ;;  %s1403_s2 = smov 64  }
  0x8b   :  { %1245 = vmatprep.mubr.msk.bf16.mxu0 %vm1401_vm0, %v1400_v6  ;;  %v100_v29 = vmul.f32 %v1134_v23, %v97_v22 }
  0x8c   :  { %v117_v31 = vadd.f32 %v115_v28, %v99_v27  ;;  %v1148_v27 = vadd.f32 -1.0, %v1564_v25 }
  0x8e   :  { %v350_v28 = vmul.f32 10000.0, %v1148_v27 }
  0x91   :  { %v113_v26 = vpop.permute.xlu1 %112 }
  0x92   :  { %v116_v30 = vmul.f32 %v1135_v24, %v113_v26  ;;  %v352_v26 = vshrl.u32 %v56_v14, 7 }
  0x94   :  { %v118_v36 = vadd.f32 %v116_v30, %v100_v29  ;;  %v353_v29 = vsub.s32 0, %v352_v26 }
  0x96   :  { %v354_v30 = vrot.slane %v350_v28, %v353_v29 }
 0x15d   :  { %v181_v32 = vpop.f32.mrb[0].mxu0 }
 0x15e   :  { %v182_v34 = vadd.f32 %v181_v32, %v117_v31  ;;  %v1227_v35 = vpop.f32.mrb[1].mxu0 }
 0x15f   :  { %v184_v37 = vpop.f32.mrb[2].mxu0 }
 0x160   :  { %v185_v39 = vadd.f32 %v184_v37, %v118_v36  ;;  %v1228_v40 = vpop.f32.mrb[3].mxu0  ;;  %v190_v41 = vadd.f32 %v188_v33, %v182_v34  ;;  %v471_v37 = vsub.s32 1, %v352_v26 }
 0x162   :  { %v193_v42 = vsel %vm192_vm4, %v190_v41, 0.0  ;;  %v191_v43 = vadd.f32 %v189_v38, %v185_v39  ;;  %v472_v39 = vrot.slane %v350_v28, %v471_v37 }
 0x163   :  { %194 = vadd.xlane.f32.xlu0 %v193_v42 }
 0x164   :  { %v196_v44 = vsel %vm192_vm4, %v191_v43, 0.0 }
 0x165   :  { %197 = vadd.xlane.f32.xlu1 %v196_v44 }
 0x1f0   :  { %v195_v45 = vpop.xlane.xlu0 %194 }
 0x1f1   :  { %v200_v46 = vmul.f32 0.03125, %v195_v45 }
 0x1f2   :  { %v198_v47 = vpop.xlane.xlu1 %197 }
 0x1f3   :  { %v202_v48 = vsub.f32 %v190_v41, %v200_v46  ;;  %v201_v49 = vmul.f32 0.03125, %v198_v47 }
 0x1f5   :  { %v203_v50 = vsub.f32 %v191_v43, %v201_v49  ;;  %v204_v51 = vmul.f32 %v202_v48, %v202_v48 }
 0x1f7   :  { %v206_v52 = vsel %vm192_vm4, %v204_v51, 0.0  ;;  %v205_v53 = vmul.f32 %v203_v50, %v203_v50 }
 0x1f8   :  { %207 = vadd.xlane.f32.xlu0 %v206_v52 }
 0x1f9   :  { %v209_v54 = vsel %vm192_vm4, %v205_v53, 0.0 }
 0x1fc   :  { %210 = vadd.xlane.f32.xlu0 %v209_v54 }
 0x285   :  { %v208_v57 = vpop.xlane.xlu0 %207 }
 0x286   :  { %v212_v58 = vmul.f32 0.03125, %v208_v57 }
 0x288   :  { %v214_v59 = vadd.f32 1e-12, %v212_v58 }
 0x289   :  { %v211_v60 = vpop.xlane.xlu0 %210 }
 0x28a   :  { %1343 = vrsqrt.f32 %v214_v59  ;;  %v213_v61 = vmul.f32 0.03125, %v211_v60 }
 0x28c   :  { %v215_v62 = vadd.f32 1e-12, %v213_v61 }
 0x28e   :  { %1345 = vrsqrt.f32 %v215_v62 }
 0x294   :  { %v1344_v63 = vpop.eup %1343 }
 0x295   :  { %v218_v0 = vmul.f32 %v1344_v63, %v202_v48 }
 0x297   :  { %v224_v4 = vmul.f32 %v1141_v1, %v218_v0 }
 0x298   :  { %v1346_v2 = vpop.eup %1345 }
 0x299   :  { %v219_v3 = vmul.f32 %v1346_v2, %v203_v50  ;;  %v1539_v8 = vadd.f32 %v1142_v5, %v224_v4  ;;  %v1329_v4 = vld [vmem:[%s1714_s7] sm:$0xff]  }
 0x29b   :  { %v225_v7 = vmul.f32 %v1141_v1, %v219_v3 }
 0x29d   :  { %v1541_v9 = vadd.f32 %v1142_v5, %v225_v7  ;;  %v1330_v5 = vld [vmem:[%s1714_s7 + $0x8] sm:$0xff]  }
 0x29f   :  { %v232_v10 = vpack.c.bf16 %v1541_v9, %v1539_v8 }
 0x2a1   :  { %1234 = vmatmul.mubr.msk.bf16.vlgmr.msra.gmra.mrb[0].mxu1 %vm192_vm4, %v232_v10 }
 0x2a2   :  { %1239 = vmatprep.mubr.msk.bf16.mxu1 %vm1401_vm0, %v1400_v6 }
 0x374   :  { %v290_v12 = vpop.f32.mrb[0].mxu1 }
 0x375   :  { %v291_v13 = vadd.f32 %v1143_v11, %v290_v12  ;;  %v1235_v15 = vpop.f32.mrb[1].mxu1 }
 0x376   :  { %v293_v16 = vpop.f32.mrb[2].mxu1 }
 0x377   :  { %v298_v17 = vpack.c.bf16 %v291_v13, %v291_v13  ;;  %v294_v18 = vadd.f32 %v1143_v11, %v293_v16  ;;  %v1236_v19 = vpop.f32.mrb[3].mxu1 }
 0x378   :  { %v1152_v19 = vld [vmem:[%s1718_s11 + $0x2] ss:$0 sm:$0xff] }
 0x379   :  { %v418_v20 = vpack.c.bf16 %v294_v18, %v294_v18  ;;  %300 = vrot.lane.b32.xlu1 %v298_v17, %s1402_s13 }
 0x37b   :  { %420 = vrot.lane.b32.xlu0 %v418_v20, %s1402_s13 }
 0x3eb   :  { %v301_v21 = vpop.permute.xlu1 %300 }
 0x3ec   :  { %v306_v22 = vsel %vm192_vm4, %v301_v21, 0 }
 0x3ed   :  { %1238 = vmatpush3.bf16.xpose.msra.mxu1 %v306_v22  ;;  %v421_v23 = vpop.permute.xlu0 %420 }
 0x3ee   :  { %1249 = vmatprep.subr.bf16.mxu1 %v1400_v6  ;;  %v426_v24 = vsel %vm192_vm4, %v421_v23, 0 }
 0x3f4   :  { %1240 = vmatmul.mubr.msk.bf16.vlgmr.msra.gmra.mrb[4].mxu1 %vm192_vm4, %v298_v17 }
 0x3f5   :  { %1250 = vmatpush3.bf16.xpose.msra.mxu1 %v426_v24  ;;  %1251 = vmatprep.mubr.msk.bf16.mxu1 %vm1401_vm0, %v1400_v6 }
 0x3f6   :  { %1261 = vmatprep.subr.bf16.mxu1 %v1400_v6 }
 0x3fc   :  { %1252 = vmatmul.mubr.msk.bf16.vlgmr.msra.gmra.mrb[8].mxu1 %vm192_vm4, %v418_v20 }
 0x3fd   :  { %1265 = vmatprep.mubr.msk.bf16.mxu1 %vm1401_vm0, %v1400_v6  ;;  %1262 = vmatpush3.bf16.msra.mxu1 %v1329_v4 }
 0x3fe   :  { %1263 = vmatprep.subr.bf16.mxu1 %v1400_v6 }
 0x401   :  { %1264 = vmatpush3.bf16.msra.mxu1 %v1330_v5 }
 0x402   :  { %1277 = vmatprep.subr.bf16.mxu1 %v1400_v6 }
 0x4c7   :  { %v342_v31 = vpop.f32.mrb[4].mxu1 }
 0x4c8   :  { %v348_v32 = vmul.f32 0.17677669, %v342_v31  ;;  %v1241_v33 = vpop.f32.mrb[5].mxu1 }
 0x4c9   :  { %v345_v34 = vpop.f32.mrb[6].mxu1 }
 0x4ca   :  { %v1242_v35 = vpop.f32.mrb[7].mxu1  ;;  %v355_v36 = vadd.f32 %v354_v30, %v348_v32 }
 0x4cc   :  { %v357_v38 = vsel %vm356_vm5, %v355_v36, -inf }
 0x4cd   :  { %358 = vmax.xlane.f32.xlu1 %v357_v38 }
 0x4cf   :  { %v462_v40 = vpop.f32.mrb[8].mxu1 }
 0x4d0   :  { %v468_v41 = vmul.f32 0.17677669, %v462_v40  ;;  %v1253_v14 = vpop.f32.mrb[9].mxu1  ;;  %v1332_v40 = vld [vmem:[%s1715_s8 + $0x8] sm:$0xff]  }
 0x4d1   :  { %v465_v42 = vpop.f32.mrb[10].mxu1 }
 0x4d2   :  { %v1254_v43 = vpop.f32.mrb[11].mxu1  ;;  %v473_v44 = vadd.f32 %v472_v39, %v468_v41 }
 0x4d4   :  { %v474_v45 = vsel %vm356_vm5, %v473_v44, -inf }
 0x4d5   :  { %475 = vmax.xlane.f32.xlu0 %v474_v45 }
 0x55a   :  { %v359_v46 = vpop.xlane.xlu1 %358 }
 0x55b   :  { %v360_v47 = vsub.f32 %v355_v36, %v359_v46 }
 0x55d   :  { %v361_v48 = vmul.f32 1.442695, %v360_v47  ;;  %v1156_v47 = vld [vmem:[%s1718_s11 + $0x7] ss:$0 sm:$0xff] }
 0x55f   :  { %1347 = vpow2.f32 %v361_v48 }
 0x562   :  { %v476_v49 = vpop.xlane.xlu0 %475 }
 0x563   :  { %v477_v50 = vsub.f32 %v473_v44, %v476_v49 }
 0x565   :  { %v478_v51 = vmul.f32 1.442695, %v477_v50 }
 0x567   :  { %1349 = vpow2.f32 %v478_v51 }
 0x569   :  { %v1348_v52 = vpop.eup %1347 }
 0x56a   :  { %v363_v53 = vsel %vm356_vm5, %v1348_v52, 0.0 }
 0x56b   :  { %364 = vadd.xlane.f32.xlu1 %v363_v53 }
 0x571   :  { %v1350_v54 = vpop.eup %1349 }
 0x572   :  { %v480_v55 = vsel %vm356_vm5, %v1350_v54, 0.0 }
 0x573   :  { %481 = vadd.xlane.f32.xlu0 %v480_v55 }
 0x57c   :  { %369 = vrot.lane.b32.xlu1 %v298_v17, %s1403_s2 }
 0x589   :  { %486 = vrot.lane.b32.xlu0 %v418_v20, %s1403_s2 }
 0x5f8   :  { %v365_v56 = vpop.xlane.xlu1 %364 }
 0x5f9   :  { %1351 = vrcp.f32 %v365_v56 }
 0x5fc   :  { %v370_v57 = vpop.permute.xlu1 %369 }
 0x5fd   :  { %v376_v58 = vsel %vm374_vm6, %v370_v57, 0  ;;  %v1333_v57 = vld [vmem:[%s1716_s9] sm:$0xff]  }
 0x5fe   :  { %1244 = vmatpush3.bf16.msra.mxu0 %v376_v58  ;;  %v1334_v58 = vld [vmem:[%s1716_s9 + $0x8] sm:$0xff]  }
 0x5ff   :  { %1255 = vmatprep.subr.bf16.mxu0 %v1400_v6 }
 0x600   :  { %v482_v59 = vpop.xlane.xlu0 %481 }
 0x601   :  { %1353 = vrcp.f32 %v482_v59  ;;  %v1335_v59 = vld [vmem:[%s1716_s9 + $0x10] sm:$0xff]  }
 0x603   :  { %v1352_v60 = vpop.eup %1351 }
 0x604   :  { %v367_v61 = vmul.f32 %v1352_v60, %v1348_v52  ;;  %v487_v62 = vpop.permute.xlu0 %486  ;;  %v1157_v52 = vld [vmem:[%s1718_s11 + $0x8] ss:$0 sm:$0xff]  ;;  %v1336_v60 = vld [vmem:[%s1716_s9 + $0x18] sm:$0xff]  }
 0x605   :  { %v492_v0 = vsel %vm374_vm6, %v487_v62, 0  ;;  %v1338_v62 = vld [vmem:[%s1716_s9 + $0x28] sm:$0xff]  }
 0x606   :  { %v368_v63 = vpack.c.bf16 %v367_v61, %v367_v61  ;;  %v1337_v61 = vld [vmem:[%s1716_s9 + $0x20] sm:$0xff]  }
 0x608   :  { %1246 = vmatmul.mubr.msk.bf16.vlgmr.msra.gmra.mrb[4].mxu0 %vm356_vm5, %v368_v63  ;;  %v1339_v63 = vld [vmem:[%s1716_s9 + $0x30] sm:$0xff]  }
 0x609   :  { %1256 = vmatpush3.bf16.msra.mxu0 %v492_v0  ;;  %1257 = vmatprep.mubr.msk.bf16.mxu0 %vm1401_vm0, %v1400_v6  ;;  %v1340_v0 = vld [vmem:[%s1716_s9 + $0x38] sm:$0xff]  }
 0x60a   :  { %1269 = vmatprep.subr.bf16.mxu0 %v1400_v6 }
 0x60b   :  { %v1354_v1 = vpop.eup %1353 }
 0x60c   :  { %v484_v2 = vmul.f32 %v1354_v1, %v1350_v54  ;;  %v1158_v1 = vld [vmem:[%s1718_s11 + $0x1] ss:$0 sm:$0xff] }
 0x60e   :  { %v485_v3 = vpack.c.bf16 %v484_v2, %v484_v2 }
 0x610   :  { %1258 = vmatmul.mubr.msk.bf16.vlgmr.msra.gmra.mrb[8].mxu0 %vm356_vm5, %v485_v3 }
 0x611   :  { %1273 = vmatprep.mubr.msk.bf16.mxu0 %vm1401_vm0, %v1400_v6 }
 0x6db   :  { %v412_v7 = vpop.f32.mrb[4].mxu0 }
 0x6dc   :  { %v1247_v10 = vpop.f32.mrb[5].mxu0 }
 0x6dd   :  { %v415_v11 = vpop.f32.mrb[6].mxu0 }
 0x6de   :  { %v1248_v12 = vpop.f32.mrb[7].mxu0 }
 0x6e3   :  { %v528_v13 = vpop.f32.mrb[8].mxu0 }
 0x6e4   :  { %v534_v15 = vpack.c.bf16 %v528_v13, %v412_v7  ;;  %v1259_v16 = vpop.f32.mrb[9].mxu0 }
 0x6e5   :  { %v531_v17 = vpop.f32.mrb[10].mxu0 }
 0x6e6   :  { %v1260_v18 = vpop.f32.mrb[11].mxu0  ;;  %1266 = vmatmul.mubr.msk.bf16.vlgmr.msra.gmra.mrb[12].mxu1 %vm192_vm4, %v534_v15 }
 0x6e7   :  { %1293 = vmatprep.mubr.msk.bf16.mxu1 %vm1401_vm0, %v1400_v6  ;;  %1278 = vmatpush3.bf16.msra.mxu1 %v1333_v57 }
 0x6e8   :  { %1279 = vmatprep.subr.bf16.mxu1 %v1400_v6 }
 0x6eb   :  { %1280 = vmatpush3.bf16.msra.mxu1 %v1334_v58 }
 0x6ec   :  { %1281 = vmatprep.subr.bf16.mxu1 %v1400_v6 }
 0x6ef   :  { %1282 = vmatpush3.bf16.msra.mxu1 %v1335_v59  ;;  %v1171_v59 = vld [vmem:[%s1718_s11 + $0x9] ss:$0 sm:$0xff] }
 0x6f0   :  { %1283 = vmatprep.subr.bf16.mxu1 %v1400_v6 }
 0x6f3   :  { %1284 = vmatpush3.bf16.msra.mxu1 %v1336_v60 }
 0x6f4   :  { %1285 = vmatprep.subr.bf16.mxu1 %v1400_v6 }
 0x6f7   :  { %1286 = vmatpush3.bf16.msra.mxu1 %v1337_v61 }
 0x6f8   :  { %1287 = vmatprep.subr.bf16.mxu1 %v1400_v6 }
 0x6fb   :  { %1288 = vmatpush3.bf16.msra.mxu1 %v1338_v62  ;;  %v1172_v62 = vld [vmem:[%s1718_s11 + $0xa] ss:$0 sm:$0xff] }
 0x6fc   :  { %1289 = vmatprep.subr.bf16.mxu1 %v1400_v6 }
 0x6ff   :  { %1290 = vmatpush3.bf16.msra.mxu1 %v1339_v63 }
 0x700   :  { %1291 = vmatprep.subr.bf16.mxu1 %v1400_v6 }
 0x703   :  { %1292 = vmatpush3.bf16.msra.mxu1 %v1340_v0 }
 0x7b9   :  { %v592_v20 = vpop.f32.mrb[12].mxu1 }
 0x7ba   :  { %v593_v21 = vadd.f32 %v1152_v19, %v592_v20  ;;  %v1267_v22 = vpop.f32.mrb[13].mxu1 }
 0x7bb   :  { %v595_v23 = vpop.f32.mrb[14].mxu1 }
 0x7bc   :  { %v596_v24 = vadd.f32 %v1152_v19, %v595_v23  ;;  %v1268_v26 = vpop.f32.mrb[15].mxu1  ;;  %v599_v27 = vadd.f32 %v593_v21, %v1539_v8 }
 0x7be   :  { %v601_v28 = vsel %vm192_vm4, %v599_v27, 0.0  ;;  %v600_v29 = vadd.f32 %v596_v24, %v1541_v9  ;;  %v1331_v9 = vld [vmem:[%s1715_s8] sm:$0xff]  }
 0x7bf   :  { %602 = vadd.xlane.f32.xlu1 %v601_v28  ;;  %1270 = vmatpush3.bf16.msra.mxu0 %v1331_v9 }
 0x7c0   :  { %v604_v30 = vsel %vm192_vm4, %v600_v29, 0.0  ;;  %1271 = vmatprep.subr.bf16.mxu0 %v1400_v6 }
 0x7c1   :  { %605 = vadd.xlane.f32.xlu0 %v604_v30 }
 0x7c3   :  { %1272 = vmatpush3.bf16.msra.mxu0 %v1332_v40 }
 0x7c4   :  { %1297 = vmatprep.subr.mxu0 %v1400_v6 }
 0x84c   :  { %v603_v31 = vpop.xlane.xlu1 %602 }
 0x84d   :  { %v607_v32 = vmul.f32 0.03125, %v603_v31 }
 0x84e   :  { %v606_v33 = vpop.xlane.xlu0 %605 }
 0x84f   :  { %v609_v34 = vsub.f32 %v599_v27, %v607_v32  ;;  %v608_v35 = vmul.f32 0.03125, %v606_v33  ;;  %v1162_v32 = vld [vmem:[%s1718_s11 + $0x3] ss:$0 sm:$0xff] }
 0x851   :  { %v610_v36 = vsub.f32 %v600_v29, %v608_v35  ;;  %v611_v37 = vmul.f32 %v609_v34, %v609_v34 }
 0x853   :  { %v613_v38 = vsel %vm192_vm4, %v611_v37, 0.0  ;;  %v612_v39 = vmul.f32 %v610_v36, %v610_v36 }
 0x854   :  { %614 = vadd.xlane.f32.xlu1 %v613_v38 }
 0x855   :  { %v616_v8 = vsel %vm192_vm4, %v612_v39, 0.0 }
 0x856   :  { %617 = vadd.xlane.f32.xlu0 %v616_v8 }
 0x8e1   :  { %v615_v41 = vpop.xlane.xlu1 %614 }
 0x8e2   :  { %v619_v14 = vmul.f32 0.03125, %v615_v41 }
 0x8e3   :  { %v618_v42 = vpop.xlane.xlu0 %617 }
 0x8e4   :  { %v621_v43 = vadd.f32 1e-12, %v619_v14  ;;  %v620_v44 = vmul.f32 0.03125, %v618_v42 }
 0x8e6   :  { %1355 = vrsqrt.f32 %v621_v43  ;;  %v622_v45 = vadd.f32 1e-12, %v620_v44 }
 0x8e8   :  { %1357 = vrsqrt.f32 %v622_v45 }
 0x8f0   :  { %v1356_v46 = vpop.eup %1355 }
 0x8f1   :  { %v625_v48 = vmul.f32 %v1356_v46, %v609_v34 }
 0x8f2   :  { %v1358_v49 = vpop.eup %1357 }
 0x8f3   :  { %v631_v50 = vmul.f32 %v1156_v47, %v625_v48  ;;  %v626_v51 = vmul.f32 %v1358_v49, %v610_v36 }
 0x8f5   :  { %v632_v53 = vmul.f32 %v1156_v47, %v626_v51  ;;  %v1614_v54 = vadd.f32 %v1157_v52, %v631_v50  ;;  %v1026_v50 = vsel %vm1025_vm7, %v1564_v25, 0.0  ;;  %v946_v51 = vsel %vm945_vm8, %v1564_v25, 0.0 }
 0x8f7   :  { %v1616_v55 = vadd.f32 %v1157_v52, %v632_v53 }
 0x8f9   :  { %v639_v56 = vpack.c.bf16 %v1616_v55, %v1614_v54 }
 0x8fb   :  { %1274 = vmatmul.mubr.msk.bf16.vlgmr.msra.gmra.mrb[12].mxu0 %vm192_vm4, %v639_v56 }
 0x8fc   :  { %1299 = vmatprep.mubr.msk.f32.mxu0 %vm1401_vm0, %v1400_v6 }
 0x9ce   :  { %v697_v2 = vpop.f32.mrb[12].mxu0 }
 0x9cf   :  { %v698_v3 = vadd.f32 %v1158_v1, %v697_v2  ;;  %v1275_v4 = vpop.f32.mrb[13].mxu0 }
 0x9d0   :  { %v700_v5 = vpop.f32.mrb[14].mxu0  ;;  %v952_v4 = vrot.slane %v1564_v25, 1 }
 0x9d1   :  { %v706_v7 = vmul.f32 0.044715, %v698_v3  ;;  %v701_v10 = vadd.f32 %v1158_v1, %v700_v5  ;;  %v1276_v11 = vpop.f32.mrb[15].mxu0  ;;  %v704_v26 = vmul.f32 0.5, %v698_v3 }
 0x9d3   :  { %v708_v12 = vmul.f32 %v706_v7, %v698_v3  ;;  %v707_v13 = vmul.f32 0.044715, %v701_v10  ;;  %v705_v27 = vmul.f32 0.5, %v701_v10 }
 0x9d5   :  { %v710_v15 = vmul.f32 %v708_v12, %v698_v3  ;;  %v709_v16 = vmul.f32 %v707_v13, %v701_v10 }
 0x9d7   :  { %v712_v17 = vadd.f32 %v710_v15, %v698_v3  ;;  %v711_v18 = vmul.f32 %v709_v16, %v701_v10 }
 0x9d9   :  { %v714_v19 = vmul.f32 0.7978846, %v712_v17  ;;  %v713_v20 = vadd.f32 %v711_v18, %v701_v10 }
 0x9db   :  { %1359 = vtanh.f32 %v714_v19  ;;  %v715_v21 = vmul.f32 0.7978846, %v713_v20 }
 0x9dd   :  { %1361 = vtanh.f32 %v715_v21 }
 0x9e5   :  { %v1360_v22 = vpop.eup %1359 }
 0x9e6   :  { %v718_v23 = vadd.f32 1.0, %v1360_v22 }
 0x9e7   :  { %v1362_v24 = vpop.eup %1361 }
 0x9e8   :  { %v719_v28 = vadd.f32 1.0, %v1362_v24  ;;  %v720_v29 = vmul.f32 %v718_v23, %v704_v26  ;;  %v1341_v26 = vld [vmem:[%s1717_s10] sm:$0xff]  }
 0x9ea   :  { %v721_v30 = vmul.f32 %v719_v28, %v705_v27  ;;  %v1342_v27 = vld [vmem:[%s1717_s10 + $0x8] sm:$0xff]  }
 0x9ec   :  { %v722_v31 = vpack.c.bf16 %v721_v30, %v720_v29 }
 0x9ee   :  { %1294 = vmatmul.mubr.bf16.vlgmr.msra.gmra.mrb[16].mxu1 %v722_v31 }
 0xac1   :  { %v825_v33 = vpop.f32.mrb[16].mxu1 }
 0xac2   :  { %v826_v34 = vadd.f32 %v1162_v32, %v825_v33  ;;  %v1295_v35 = vpop.f32.mrb[17].mxu1 }
 0xac3   :  { %v828_v36 = vpop.f32.mrb[18].mxu1 }
 0xac4   :  { %v829_v37 = vadd.f32 %v1162_v32, %v828_v36  ;;  %v1296_v38 = vpop.f32.mrb[19].mxu1  ;;  %v832_v39 = vadd.f32 %v826_v34, %v1614_v54 }
 0xac6   :  { %v834_v8 = vsel %vm192_vm4, %v832_v39, 0.0  ;;  %v833_v9 = vadd.f32 %v829_v37, %v1616_v55 }
 0xac7   :  { %835 = vadd.xlane.f32.xlu1 %v834_v8 }
 0xac8   :  { %v837_v40 = vsel %vm192_vm4, %v833_v9, 0.0 }
 0xac9   :  { %838 = vadd.xlane.f32.xlu0 %v837_v40 }
 0xb54   :  { %v836_v41 = vpop.xlane.xlu1 %835 }
 0xb55   :  { %v840_v14 = vmul.f32 0.03125, %v836_v41 }
 0xb56   :  { %v839_v42 = vpop.xlane.xlu0 %838 }
 0xb57   :  { %v842_v43 = vsub.f32 %v832_v39, %v840_v14  ;;  %v841_v44 = vmul.f32 0.03125, %v839_v42 }
 0xb59   :  { %v843_v45 = vsub.f32 %v833_v9, %v841_v44  ;;  %v844_v46 = vmul.f32 %v842_v43, %v842_v43 }
 0xb5b   :  { %v846_v47 = vsel %vm192_vm4, %v844_v46, 0.0  ;;  %v845_v48 = vmul.f32 %v843_v45, %v843_v45 }
 0xb5c   :  { %847 = vadd.xlane.f32.xlu1 %v846_v47 }
 0xb5d   :  { %v849_v49 = vsel %vm192_vm4, %v845_v48, 0.0 }
 0xb5e   :  { %850 = vadd.xlane.f32.xlu0 %v849_v49 }
 0xb60   :  { %1027 = vadd.xlane.f32.xlu1 %v1026_v50 }
 0xb62   :  { %947 = vadd.xlane.f32.xlu0 %v946_v51 }
 0xbe9   :  { %v848_v52 = vpop.xlane.xlu1 %847 }
 0xbea   :  { %v852_v53 = vmul.f32 0.03125, %v848_v52 }
 0xbeb   :  { %v851_v54 = vpop.xlane.xlu0 %850 }
 0xbec   :  { %v854_v55 = vadd.f32 1e-12, %v852_v53  ;;  %v853_v56 = vmul.f32 0.03125, %v851_v54 }
 0xbed   :  { %v1028_v5 = vpop.xlane.xlu1 %1027 }
 0xbee   :  { %1363 = vrsqrt.f32 %v854_v55  ;;  %v855_v57 = vadd.f32 1e-12, %v853_v56  ;;  %v1029_v7 = vmax.f32 %v1028_v5, 1e-09 }
 0xbef   :  { %v948_v10 = vpop.xlane.xlu0 %947 }
 0xbf0   :  { %1365 = vrsqrt.f32 %v855_v57  ;;  %v1031_v11 = vrot.slane %v1029_v7, 1  ;;  %v949_v12 = vmax.f32 %v948_v10, 1e-09 }
 0xbf2   :  { %1367 = vrcp.f32 %v1031_v11 }
 0xbf3   :  { %1369 = vrcp.f32 %v949_v12 }
 0xbf8   :  { %v1364_v58 = vpop.eup %1363 }
 0xbf9   :  { %v858_v60 = vmul.f32 %v1364_v58, %v842_v43 }
 0xbfa   :  { %v1366_v61 = vpop.eup %1365 }
 0xbfb   :  { %v864_v63 = vmul.f32 %v1171_v59, %v858_v60  ;;  %v859_v0 = vmul.f32 %v1366_v61, %v843_v45 }
 0xbfc   :  { %v1368_v15 = vpop.eup %1367 }
 0xbfd   :  { %v870_v1 = vadd.f32 %v1172_v62, %v864_v63  ;;  %v865_v2 = vmul.f32 %v1171_v59, %v859_v0  ;;  %v1370_v16 = vpop.eup %1369 }
 0xbff   :  { %1298 = vmatpush3.msra.mxu0 %v870_v1  ;;  %v871_v3 = vadd.f32 %v1172_v62, %v865_v2 }
 0xc00   :  { %1300 = vmatmul.mubr.msk.f32.vlgmr.msra.gmra.mrb[16].mxu0 %vm356_vm5, %v1564_v25  ;;  %1302 = vmatprep.subr.mxu0 %v1400_v6 }
 0xc01   :  { %1303 = vmatpush3.msra.mxu0 %v871_v3  ;;  %1304 = vmatprep.mubr.msk.f32.mxu0 %vm1401_vm0, %v1400_v6 }
 0xc02   :  { %1307 = vmatprep.subr.bf16.mxu0 %v1400_v6 }
 0xc04   :  { %1305 = vmatmul.mubr.msk.f32.vlgmr.msra.gmra.mrb[18].mxu0 %vm356_vm5, %v952_v4 }
 0xc05   :  { %1311 = vmatprep.mubr.msk.bf16.mxu0 %vm1401_vm0, %v1400_v6  ;;  %1308 = vmatpush3.bf16.msra.mxu0 %v1341_v26 }
 0xc06   :  { %1309 = vmatprep.subr.bf16.mxu0 %v1400_v6  ;;  %v1175_v6 = vld [vmem:[%s1718_s11 + $0x4] ss:$0 sm:$0xff] }
 0xc09   :  { %1310 = vmatpush3.bf16.msra.mxu0 %v1342_v27 }
 0xcd3   :  { %v941_v13 = vpop.f32.mrb[16].mxu0 }
 0xcd4   :  { %v1301_v25 = vpop.f32.mrb[17].mxu0  ;;  %v951_v20 = vmul.f32 %v1370_v16, %v941_v13 }
 0xcd7   :  { %v1021_v17 = vpop.f32.mrb[18].mxu0 }
 0xcd8   :  { %v1034_v18 = vmul.f32 %v1368_v15, %v1021_v17  ;;  %v1306_v19 = vpop.f32.mrb[19].mxu0 }
 0xcda   :  { %v1036_v21 = vrot.slane %v1034_v18, 7 }
 0xcdc   :  { %v1039_v22 = vsel %vm1038_vm9, %v951_v20, %v1036_v21 }
 0xcdd   :  { %v1040_v23 = vmul.f32 %v1039_v22, %v1039_v22 }
 0xcdf   :  { %v1042_v24 = vsel %vm1041_vm10, %v1040_v23, 0.0 }
 0xce0   :  { %1043 = vadd.xlane.f32.xlu1 %v1042_v24 }
 0xd6d   :  { %v1044_v28 = vpop.xlane.xlu1 %1043 }
 0xd6e   :  { %1371 = vrsqrt.f32 %v1044_v28  ;;  %vm1047_vm11 = vcmp.eq.f32.partialorder %v1044_v28, inf  ;;  %v1050_v31 = vand.u32 2147483648, %v1044_v28  ;;  %vm1049_vm12 = vcmp.eq.f32.partialorder %v1044_v28, 0.0 }
 0xd78   :  { %v1372_v29 = vpop.eup %1371 }
 0xd79   :  { %v1046_v30 = vmul.f32 %v1372_v29, %v1044_v28 }
 0xd7b   :  { %v1048_v32 = vsel %vm1047_vm11, %v1044_v28, %v1046_v30 }
 0xd7c   :  { %v1051_v33 = vsel %vm1049_vm12, %v1050_v31, %v1048_v32 }
 0xd7d   :  { %v1052_v34 = vmax.f32 %v1051_v33, 1e-12 }
 0xd7f   :  { %1373 = vrcp.f32 %v1052_v34 }
 0xd89   :  { %v1374_v35 = vpop.eup %1373 }
 0xd8a   :  { %v1054_v36 = vmul.f32 %v1374_v35, %v1039_v22 }
 0xd8c   :  { %v1055_v37 = vpack.c.bf16 %v1054_v36, %v1054_v36 }
 0xd8e   :  { %1312 = vmatmul.mubr.msk.bf16.vlgmr.msra.gmra.mrb[20].mxu0 %vm192_vm4, %v1055_v37 }
 0xe61   :  { %v1113_v38 = vpop.f32.mrb[20].mxu0 }
 0xe62   :  { %v1114_v39 = vadd.f32 %v1175_v6, %v1113_v38  ;;  %v1313_v8 = vpop.f32.mrb[21].mxu0 }
 0xe63   :  { %v1116_v9 = vpop.f32.mrb[22].mxu0 }
 0xe64   :  { %1119 = vst [vmem:[#allocation2] sm:$0x3] %v1114_v39  ;;  %v1314_v40 = vpop.f32.mrb[23].mxu0 }
 0xe65   :  { %1386 = shalt.err (!%p1383_p4)
}
 0xe66   :  { %s1387_s11 = scalar_lea.hbm %s1719_s12, 32 }
 0xe67   :  { %p1388_p5 = scmp.ne.s32.totalorder %s1719_s12, %s1387_s11  ;;  %p1391_p6 = scmp.lt.u32.totalorder %s1387_s11, %s1719_s12 }
 0xe69   :  { %p1393_p7 = pnand %p1391_p6, %p1388_p5 }
 0xe6b   :  { %1396 = shalt.err (!%p1393_p7)
}
 0xe6c   :  { %1129 = dma.vmem_to_hbm [thread:$0]  %s1127_s25, 32, %s1719_s12, [#allocation3]  }
 0xe6d   :  { %1397 = dma.done.wait [#allocation3], 32  }
 0xe6e   :  { %1398 = vsyncadd [#allocation3], 4294967264 }
 0xe6f   :  { %1133 = vsyncpa [#allocation3], 1 }

</bundles_post_ra>
